<compile_context>
chip_gen: v5e
topology: v5e:2x2
jax: 0.10.0
libtpu: 0.0.40
codegen_flags: <defaults>
</compile_context>

<pallas_src>
import jax
import jax.numpy as jnp
from jax.experimental import pallas as pl
from jax.experimental.pallas import tpu as pltpu

_LANE = 128
_MAX_TB = 2048        # upper clamp on the batch tile (multiple of 8)
_SINGLE_BLOCK_B = 128  # below this, one full-batch block (pipelining not worth 0.35us/step)


def _round_up(x, m):
    return ((x + m - 1) // m) * m


def roi_cls_kernel(x_ref, w_ref, b_ref, o_ref):
    # x_ref: (TB, F) f32   w_ref: (F, Cp) bf16 (Cp = 128, lane-padded)
    # b_ref: (1, C)  f32   o_ref: (TB, C)  with C = num_classes (narrow, un-padded)
    x_bf16 = x_ref[...].astype(jnp.bfloat16)
    logits_p = jnp.dot(x_bf16, w_ref[...], preferred_element_type=jnp.float32)  # (TB, Cp)
    C = o_ref.shape[1]
    logits = logits_p[:, :C] + b_ref[...]
    # sigmoid(z) = 0.5 * tanh(0.5 * z) + 0.5  -> one EUP push, rest on VALU.
    o_ref[...] = (0.5 * jnp.tanh(0.5 * logits) + 0.5).astype(o_ref.dtype)


def prepare_params(weight, bias, lane=_LANE):
    """One-time parameter prep (module init, NOT per forward).

    weight: (C, F) PyTorch nn.Linear layout; bias: (C,)
    Returns:
      w_p: (F, Cp) bf16, weight transposed and zero-padded so the MXU N dim is 128 lanes
      b_p: (1, C)  f32, bias (added after the f32 accumulation)
    """
    C, F_ = weight.shape
    Cp = _round_up(C, lane)
    w_p = jnp.zeros((F_, Cp), jnp.bfloat16).at[:, :C].set(weight.T.astype(jnp.bfloat16))
    b_p = bias.astype(jnp.float32).reshape(1, C)
    return w_p, b_p


def _batch_tile(B):
    """Pick TB so that large batches get an even number (>= 4) of grid steps."""
    if B <= _SINGLE_BLOCK_B:
        return B  # single block == full dim (always legal); tiling overhead not worth it
    steps = 4
    while pl.cdiv(B, steps) > _MAX_TB:
        steps += 2  # keep the step count even for v7x's 2 TensorCores
    return min(_round_up(pl.cdiv(B, steps), 8), _MAX_TB)


@jax.jit
def roi_cls_forward(x, w_p, b_p):
    """sigmoid(x.view(B,-1) @ W.T + b) with prepared params (w_p=(F,Cp) bf16, b_p=(1,C) f32)."""
    B = x.shape[0]
    xf = x.reshape(B, -1).astype(jnp.float32)  # torch .view(B, -1)
    F_ = xf.shape[1]
    Cp = w_p.shape[1]
    C = b_p.shape[1]
    TB = _batch_tile(B)
    grid = (pl.cdiv(B, TB),)

    cost = pl.CostEstimate(
        flops=2 * B * F_ * Cp,
        transcendentals=B * C,
        bytes_accessed=B * F_ * 4 + B * C * 4 + F_ * Cp * 2 + C * 4,
    )

    return pl.pallas_call(
        roi_cls_kernel,
        out_shape=jax.ShapeDtypeStruct((B, C), x.dtype),
        grid=grid,
        in_specs=[
            pl.BlockSpec((TB, F_), lambda i: (i, 0)),   # streamed batch tiles of x
            pl.BlockSpec((F_, Cp), lambda i: (0, 0)),   # resident bf16 weight (~48 KiB)
            pl.BlockSpec((1, C), lambda i: (0, 0)),     # resident f32 bias
        ],
        out_specs=pl.BlockSpec((TB, C), lambda i: (i, 0)),  # narrow output, no slice pass
        compiler_params=pltpu.CompilerParams(
            dimension_semantics=("parallel",),  # shard batch tiles across TCs on v7x
        ),
        cost_estimate=cost,
    )(xf, w_p, b_p)


class ROIClsNet:
    """Mirrors the PyTorch module: Linear(3*roi_crop^2 -> num_classes) + Sigmoid.

    Parameters are prepared once at construction (transpose + lane padding + bf16 cast).
    """

    def __init__(self, weight, bias):
        self.w_p, self.b_p = prepare_params(weight, bias)

    def __call__(self, x):
        return roi_cls_forward(x, self.w_p, self.b_p)


if __name__ == "__main__":
    # Small shapes consistent with the module: roi_crop=8, num_classes=5, batch=2.
    roi_crop = 8
    num_classes = 5
    batch = 2
    feat = 3 * roi_crop * roi_crop

    key = jax.random.PRNGKey(0)
    kx, kw, kb = jax.random.split(key, 3)

    x = jax.random.normal(kx, (batch, 3, roi_crop, roi_crop), dtype=jnp.float32)

    # PyTorch Linear default init: U(-1/sqrt(fan_in), 1/sqrt(fan_in)).
    bound = 1.0 / jnp.sqrt(jnp.float32(feat))
    weight = jax.random.uniform(kw, (num_classes, feat), dtype=jnp.float32,
                                minval=-bound, maxval=bound)
    bias = jax.random.uniform(kb, (num_classes,), dtype=jnp.float32,
                              minval=-bound, maxval=bound)

    net = ROIClsNet(weight, bias)  # params prepared once here

    # --- small-shape run (grid = 1 block) ---
    out = jax.block_until_ready(net(x))
    ref = jax.nn.sigmoid(x.reshape(batch, -1) @ weight.T + bias)
    assert out.shape == (batch, num_classes)
    # bf16 operands with f32 accumulation over K=192: ~1e-3-level error on probabilities.
    assert jnp.allclose(out, ref, atol=5e-3, rtol=5e-3), float(jnp.max(jnp.abs(out - ref)))

    # --- larger batch to exercise the tiled/pipelined grid path (even step count,
    #     partial last tile) ---
    big_B = 2056  # -> TB=520, grid=4 (4*520=2080, last tile partial)
    xb = jax.random.normal(kx, (big_B, 3, roi_crop, roi_crop), dtype=jnp.float32)
    out_b = jax.block_until_ready(net(xb))
    ref_b = jax.nn.sigmoid(xb.reshape(big_B, -1) @ weight.T + bias)
    assert out_b.shape == (big_B, num_classes)
    assert jnp.allclose(out_b, ref_b, atol=5e-3, rtol=5e-3), float(jnp.max(jnp.abs(out_b - ref_b)))

    print("KERNEL_OK")
</pallas_src>

<mosaic_0001>
module attributes {stable_mosaic.version = 11 : i64} {
  func.func @roi_cls_kernel(%arg0: i32, %arg1: memref<2x192xf32, #tpu.memory_space<vmem>>, %arg2: memref<192x128xbf16, #tpu.memory_space<vmem>>, %arg3: memref<1x5xf32, #tpu.memory_space<vmem>>, %arg4: memref<2x5xf32, #tpu.memory_space<vmem>>) attributes {dimension_semantics = [#tpu.dimension_semantics<parallel>], iteration_bounds = array<i64: 1>, scalar_prefetch = 0 : i64, scratch_operands = 0 : i64, tpu.core_type = #tpu.core_type<tc>, window_params = [{transform_indices = @transform_0, window_bounds = array<i64: 2, 192>}, {pipeline_mode = #tpu.pipeline_mode<synchronous>, transform_indices = @transform_1, window_bounds = array<i64: 192, 128>}, {pipeline_mode = #tpu.pipeline_mode<synchronous>, transform_indices = @transform_2, window_bounds = array<i64: 1, 5>}, {transform_indices = @transform_3, window_bounds = array<i64: 2, 5>}]} {
    %c0 = arith.constant 0 : index
    %c0_0 = arith.constant 0 : index
    %0 = vector.load %arg1[%c0, %c0_0] : memref<2x192xf32, #tpu.memory_space<vmem>>, vector<2x192xf32>
    %1 = arith.truncf %0 : vector<2x192xf32> to vector<2x192xbf16>
    %c0_1 = arith.constant 0 : index
    %c0_2 = arith.constant 0 : index
    %2 = vector.load %arg2[%c0_1, %c0_2] : memref<192x128xbf16, #tpu.memory_space<vmem>>, vector<192x128xbf16>
    %cst = arith.constant dense<0.000000e+00> : vector<2x128xf32>
    %3 = tpu.matmul %1, %2, %cst {dimension_numbers = #tpu.dot_dimension_numbers<[1], [0], [0], [1], [0, 0, 1, 1], [], []>} : vector<2x192xbf16>, vector<192x128xbf16>, vector<2x128xf32> -> vector<2x128xf32>
    %4 = vector.extract_strided_slice %3 {offsets = [0, 0], sizes = [2, 5], strides = [1, 1]} : vector<2x128xf32> to vector<2x5xf32>
    %c0_3 = arith.constant 0 : index
    %c0_4 = arith.constant 0 : index
    %5 = vector.load %arg3[%c0_3, %c0_4] : memref<1x5xf32, #tpu.memory_space<vmem>>, vector<1x5xf32>
    %6 = vector.broadcast %5 : vector<1x5xf32> to vector<2x5xf32>
    %7 = arith.addf %4, %6 : vector<2x5xf32>
    %cst_5 = arith.constant 5.000000e-01 : f32
    %8 = vector.broadcast %cst_5 : f32 to vector<2x5xf32>
    %9 = arith.mulf %8, %7 : vector<2x5xf32>
    %10 = math.tanh %9 : vector<2x5xf32>
    %cst_6 = arith.constant 5.000000e-01 : f32
    %11 = vector.broadcast %cst_6 : f32 to vector<2x5xf32>
    %12 = arith.mulf %11, %10 : vector<2x5xf32>
    %cst_7 = arith.constant 5.000000e-01 : f32
    %13 = vector.broadcast %cst_7 : f32 to vector<2x5xf32>
    %14 = arith.addf %12, %13 : vector<2x5xf32>
    %c0_8 = arith.constant 0 : index
    %c0_9 = arith.constant 0 : index
    %15 = vector.load %arg4[%c0_8, %c0_9] : memref<2x5xf32, #tpu.memory_space<vmem>>, vector<2x5xf32>
    tpu.vector_store %arg4[%c0_8, %c0_9], %14 {strides = array<i32>} : memref<2x5xf32, #tpu.memory_space<vmem>>, vector<2x5xf32>,
    return
  }
  func.func @transform_0(%arg0: i32) -> (i32, i32) {
    %c0_i32 = arith.constant 0 : i32
    %c0_i32_0 = arith.constant 0 : i32
    return %arg0, %c0_i32 : i32, i32
  }
  func.func @transform_1(%arg0: i32) -> (i32, i32) {
    %c0_i32 = arith.constant 0 : i32
    %c0_i32_0 = arith.constant 0 : i32
    %c0_i32_1 = arith.constant 0 : i32
    return %c0_i32, %c0_i32_0 : i32, i32
  }
  func.func @transform_2(%arg0: i32) -> (i32, i32) {
    %c0_i32 = arith.constant 0 : i32
    %c0_i32_0 = arith.constant 0 : i32
    %c0_i32_1 = arith.constant 0 : i32
    return %c0_i32, %c0_i32_0 : i32, i32
  }
  func.func @transform_3(%arg0: i32) -> (i32, i32) {
    %c0_i32 = arith.constant 0 : i32
    %c0_i32_0 = arith.constant 0 : i32
    return %arg0, %c0_i32 : i32, i32
  }
}

</mosaic_0001>

<bundles_post_ra>
// kernel: roi_cls_forward.1
= control target key start
LH: loop header
LB: loop body
LE: loop exit
PB: predicated region body
PF: predicated region fallthrough
CT: control target
= control target key end

     0   :  { %8 = vsyncpa [#allocation3], 0  ;;  %s351_s0 = inlined_call_operand.vmem [shape: f32[2,192], index: 0, kind: input, shape index: {}]   ;;  %s352_s1 = inlined_call_operand.hbm [shape: bf16[192,128], index: 1, kind: input, shape index: {}]   ;;  %s353_s2 = inlined_call_operand.vmem [shape: f32[1,5], index: 2, kind: input, shape index: {}]   ;;  %s354_s3 = inlined_call_operand.hbm [shape: f32[2,5], index: 3, kind: output, shape index: {}]  }
   0x1   :  { %9 = vsyncpa [#allocation4], 0  ;;  %s16_s14 = sshll.u32 %s352_s1, 4  ;;  %s315_s15 = smov [#allocation2]   ;;  %s17_s14 = int_to_ptr.hbm [resolvable:$true] %s16_s14 }
   0x2   :  { %s18_s16 = sshll.u32 %s315_s15, 4  ;;  %s316_s17 = smov 64   ;;  %s19_s16 = int_to_ptr.vmem [resolvable:$true] %s18_s16 }
   0x3   :  { %s317_s18 = smov 4  }
   0x4   :  { %24 = dma.hbm_to_vmem [thread:$0]  %s17_s14, 1536, %s19_s16, [#allocation3], %s316_s17, %s316_s17, %s317_s18  }
   0x5   :  { %311 = dma.done.wait [#allocation3], 1536  }
   0x6   :  { %312 = vsyncadd [#allocation3], 4294965760  ;;  %v251_v0 = vld [vmem:[#allocation2 + $0x38] sm:$0xff]  ;;  %v250_v2 = vld [vmem:[#allocation2 + $0x30] sm:$0xff]  ;;  %vm137_vm0 = vcmask 523264   ;;  %s318_s21 = smov [#allocation5]  }
   0x7   :  { %v255_v1 = vld [vmem:[#allocation2 + $0x58] sm:$0xff]  ;;  %141 = vmatpush.bf16.msra.mxu0 %v251_v0  ;;  %v254_v3 = vld [vmem:[#allocation2 + $0x50] sm:$0xff]  ;;  %v249_v5 = vld [vmem:[#allocation2 + $0x28] sm:$0xff]  ;;  %s183_s22 = sshll.u32 %s318_s21, 4  ;;  %s185_s25 = sshll.u32 %s354_s3, 4  ;;  %vm176_vm1 = vcmask 33792   ;;  %s184_s22 = int_to_ptr.vmem [resolvable:$true] %s183_s22  ;;  %s186_s25 = int_to_ptr.hbm [resolvable:$true] %s185_s25 }
   0x8   :  { %158 = vmatpush.bf16.msra.mxu1 %v255_v1  ;;  %v32_v4 = vld [vmem:[%s351_s0] sm:$0xf]  ;;  %v253_v6 = vld [vmem:[#allocation2 + $0x48] sm:$0xff]  ;;  %v248_v7 = vld [vmem:[#allocation2 + $0x20] sm:$0xff] }
   0x9   :  { %34 = vst [vmem:[#allocation1] ss:$4 sm:$0xff] %v32_v4  ;;  %v252_v8 = vld [vmem:[#allocation2 + $0x40] sm:$0xff]  ;;  %v247_v10 = vld [vmem:[#allocation2 + $0x18] sm:$0xff]  ;;  %v246_v12 = vld [vmem:[#allocation2 + $0x10] sm:$0xff] }
   0xa   :  { %v245_v13 = vld [vmem:[#allocation2 + $0x8] sm:$0xff]  ;;  %v244_v14 = vld [vmem:[#allocation2] sm:$0xff]  ;;  %v260_v19 = vld [vmem:[%s353_s2] ss:$0 sm:$0xff] }
   0xb   :  { %142 = vmatpush.bf16.msra.mxu0 %v250_v2 }
   0xc   :  { %159 = vmatpush.bf16.msra.mxu1 %v254_v3 }
   0xf   :  { %143 = vmatpush.bf16.msra.mxu0 %v249_v5 }
  0x10   :  { %160 = vmatpush.bf16.msra.mxu1 %v253_v6  ;;  %v36_v9 = vld.sshfl [vmem:[#allocation1 + $0x8] sm:$0xff pattern:$0x73625140]  ;;  %v35_v15 = vld.sshfl [vmem:[#allocation1] sm:$0xff pattern:$0x73625140] }
  0x11   :  { %v40_v11 = vpack.c.bf16 %v36_v9, %v36_v9  ;;  %v39_v16 = vpack.c.bf16 %v35_v15, %v35_v15 }
  0x13   :  { %144 = vmatpush.bf16.msra.mxu0 %v248_v7 }
  0x14   :  { %161 = vmatpush.bf16.msra.mxu1 %v252_v8 }
  0x17   :  { %145 = vmatpush.bf16.msra.mxu0 %v247_v10  ;;  %243 = vmatmul.msk.bf16.vlgmr.msra.gmra.mxu1 %vm137_vm0, %v40_v11 }
  0x1b   :  { %146 = vmatpush.bf16.msra.mxu0 %v246_v12 }
  0x1f   :  { %147 = vmatpush.bf16.msra.mxu0 %v245_v13 }
  0x23   :  { %148 = vmatpush.bf16.msra.mxu0 %v244_v14 }
  0x26   :  { %149 = vmatmul.bf16.vlgmr.msra.gmra.mxu0 %v39_v16 }
  0x94   :  { %v163_v17 = vpop.f32.mrf.mxu1 }
  0x9c   :  { %v165_v18 = vpop.f32.mrf.mxu1 }
  0xa3   :  { %v150_v20 = vpop.f32.mrf.mxu0 }
  0xa4   :  { %v164_v21 = vadd.f32 %v163_v17, %v150_v20 }
  0xa6   :  { %v171_v22 = vadd.f32 %v260_v19, %v164_v21 }
  0xa8   :  { %v172_v23 = vmul.f32 0.5, %v171_v22 }
  0xaa   :  { %261 = vtanh.f32 %v172_v23 }
  0xab   :  { %v152_v24 = vpop.f32.mrf.mxu0 }
  0xb0   :  { %v262_v25 = vpop.eup %261 }
  0xb1   :  { %v174_v26 = vmul.f32 0.5, %v262_v25 }
  0xb3   :  { %v175_v27 = vadd.f32 0.5, %v174_v26 }
  0xb5   :  { %177 = vst.msk [vmem:[#allocation5] sm:$0x3] %vm176_vm1, %v175_v27 }
  0xb6   :  { %188 = dma.vmem_to_hbm [thread:$0]  %s184_s22, 32, %s186_s25, [#allocation4]  }
  0xb7   :  { %313 = dma.done.wait [#allocation4], 32  }
  0xb8   :  { %314 = vsyncadd [#allocation4], 4294967264 }
  0xb9   :  { %193 = vsyncpa [#allocation3], 1 }
  0xba   :  { %194 = vsyncpa [#allocation4], 1 }

</bundles_post_ra>
